<compile_context>
chip_gen: v7x
topology: tpu7x:2x2x1
jax: 0.10.0
libtpu: 0.0.40
codegen_flags: <defaults>
</compile_context>

<pallas_src>
import jax
import jax.numpy as jnp
from jax.experimental import pallas as pl
from jax.experimental.pallas import tpu as pltpu

LANES = 128
SUBLANES = 8

_TARGET_BLOCK_BYTES = 4 * 1024 * 1024      # 4 MiB per block (per buffer)
_MIN_BLOCK_BYTES = 256 * 1024              # floor for the gridded path
_SINGLE_BLOCK_MAX_BYTES = 256 * 1024       # <= this -> one un-gridded block
_MIN_GRID_STEPS = 8                        # megacore balance on v7x (2 TCs)
_VMEM_LIMIT_BYTES = 48 * 1024 * 1024       # 2x(in+out) 4 MiB bufs = 16 MiB used


def _swish_kernel(x_ref, o_ref):
    # f32 compute; sigmoid(x) = 0.5 * tanh(x/2) + 0.5 (single EUP op).
    x = x_ref[...].astype(jnp.float32)
    sig = 0.5 * jnp.tanh(0.5 * x) + 0.5
    o_ref[...] = (x * sig).astype(o_ref.dtype)


def _round_up(x: int, m: int) -> int:
    return ((x + m - 1) // m) * m


def swish(x: jax.Array, *, block_bytes: int | None = None) -> jax.Array:
    """Elementwise x * sigmoid(x); semantics identical to the PyTorch module."""
    orig_shape = x.shape
    dtype = x.dtype
    n = x.size
    if n == 0:
        return x
    itemsize = x.dtype.itemsize

    flat = x.reshape(-1)
    aligned = (n % LANES) == 0

    if aligned:
        # Lane-dense 2-D slab (free reshape, contiguous layout).
        n_units = n // LANES
        arr = flat.reshape(n_units, LANES)
        unit_bytes = LANES * itemsize
        unit_align = SUBLANES
    else:
        # Keep 1-D; Pallas masks the partial trailing block (no pad / slice).
        n_units = n
        arr = flat
        unit_bytes = itemsize
        unit_align = SUBLANES * LANES

    total_bytes = n_units * unit_bytes

    if block_bytes is None:
        if total_bytes <= _SINGLE_BLOCK_MAX_BYTES:
            block_units = n_units  # triggers single-block path below
        else:
            bb = max(_MIN_BLOCK_BYTES,
                     min(_TARGET_BLOCK_BYTES,
                         pl.cdiv(total_bytes, _MIN_GRID_STEPS)))
            block_units = _round_up(max(1, bb // unit_bytes), unit_align)
    else:
        block_units = _round_up(max(1, block_bytes // unit_bytes), unit_align)

    if block_units >= n_units:
        # Small-input fast path: whole array as one VMEM block (no grid).
        out = pl.pallas_call(
            _swish_kernel,
            out_shape=jax.ShapeDtypeStruct(arr.shape, dtype),
        )(arr)
    else:
        grid = (pl.cdiv(n_units, block_units),)
        if aligned:
            block_shape = (block_units, LANES)
            index_map = lambda i: (i, 0)
        else:
            block_shape = (block_units,)
            index_map = lambda i: (i,)
        out = pl.pallas_call(
            _swish_kernel,
            out_shape=jax.ShapeDtypeStruct(arr.shape, dtype),
            grid_spec=pltpu.PrefetchScalarGridSpec(
                num_scalar_prefetch=0,
                grid=grid,
                in_specs=[pl.BlockSpec(block_shape, index_map)],
                out_specs=pl.BlockSpec(block_shape, index_map),
            ),
            compiler_params=pltpu.CompilerParams(
                dimension_semantics=("parallel",),
                vmem_limit_bytes=_VMEM_LIMIT_BYTES,
            ),
            cost_estimate=pl.CostEstimate(
                flops=4 * n,
                transcendentals=n,
                bytes_accessed=2 * n * itemsize,
            ),
        )(arr)

    return out.reshape(orig_shape)


if __name__ == "__main__":
    key = jax.random.PRNGKey(0)
    ks = jax.random.split(key, 4)

    def ref_swish(v):
        vf = v.astype(jnp.float32)
        return (vf * jax.nn.sigmoid(vf)).astype(v.dtype)

    # 1) Small NCHW input (EfficientNet-style activation): aligned, small
    #    -> single-block fast path.
    x = jax.random.normal(ks[0], (2, 4, 16, 16), dtype=jnp.float32)
    out = jax.block_until_ready(swish(x))
    assert out.shape == x.shape and out.dtype == x.dtype
    assert jnp.allclose(out, ref_swish(x), atol=1e-5, rtol=1e-5)

    # 2) Forced gridded aligned path (2-D blocks, parallel grid).
    out_grid = jax.block_until_ready(swish(x, block_bytes=4096))
    assert jnp.allclose(out_grid, ref_swish(x), atol=1e-5, rtol=1e-5)

    # 3) Gridded aligned path with a masked partial trailing block (12 rows,
    #    8-row blocks).
    z = jax.random.normal(ks[1], (2, 3, 16, 16), dtype=jnp.float32)
    out_z = jax.block_until_ready(swish(z, block_bytes=4096))
    assert jnp.allclose(out_z, ref_swish(z), atol=1e-5, rtol=1e-5)

    # 4) Unaligned (n % 128 != 0), small -> 1-D single whole-array block
    #    (no pad, no slice).
    y = jax.random.normal(ks[2], (3, 5, 7), dtype=jnp.float32)
    out_y = jax.block_until_ready(swish(y))
    assert out_y.shape == y.shape
    assert jnp.allclose(out_y, ref_swish(y), atol=1e-5, rtol=1e-5)

    # 5) Unaligned + gridded -> 1-D blocks with masked partial trailing block.
    w = jax.random.normal(ks[3], (3, 5, 7, 13), dtype=jnp.float32)
    out_w = jax.block_until_ready(swish(w, block_bytes=4096))
    assert jnp.allclose(out_w, ref_swish(w), atol=1e-5, rtol=1e-5)

    # 6) bf16 input (f32 compute inside the kernel, cast back on store).
    xb = x.astype(jnp.bfloat16)
    out_b = jax.block_until_ready(swish(xb))
    assert out_b.dtype == jnp.bfloat16
    assert jnp.allclose(out_b.astype(jnp.float32),
                        ref_swish(xb).astype(jnp.float32),
                        atol=3e-2, rtol=3e-2)

    print("KERNEL_OK")
</pallas_src>

<mosaic_0001>
module attributes {stable_mosaic.version = 11 : i64} {
  func.func @_swish_kernel(%arg0: memref<16x128xf32, #tpu.memory_space<vmem>>, %arg1: memref<16x128xf32, #tpu.memory_space<vmem>>) attributes {dimension_semantics = [], scalar_prefetch = 0 : i64, scratch_operands = 0 : i64, tpu.core_type = #tpu.core_type<tc>} {
    %c0 = arith.constant 0 : index
    %c0_0 = arith.constant 0 : index
    %0 = vector.load %arg0[%c0, %c0_0] : memref<16x128xf32, #tpu.memory_space<vmem>>, vector<16x128xf32>
    %cst = arith.constant 5.000000e-01 : f32
    %1 = vector.broadcast %cst : f32 to vector<16x128xf32>
    %2 = arith.mulf %1, %0 : vector<16x128xf32>
    %3 = math.tanh %2 : vector<16x128xf32>
    %cst_1 = arith.constant 5.000000e-01 : f32
    %4 = vector.broadcast %cst_1 : f32 to vector<16x128xf32>
    %5 = arith.mulf %4, %3 : vector<16x128xf32>
    %cst_2 = arith.constant 5.000000e-01 : f32
    %6 = vector.broadcast %cst_2 : f32 to vector<16x128xf32>
    %7 = arith.addf %5, %6 : vector<16x128xf32>
    %8 = arith.mulf %0, %7 : vector<16x128xf32>
    %c0_3 = arith.constant 0 : index
    %c0_4 = arith.constant 0 : index
    %9 = vector.load %arg1[%c0_3, %c0_4] : memref<16x128xf32, #tpu.memory_space<vmem>>, vector<16x128xf32>
    tpu.vector_store %arg1[%c0_3, %c0_4], %8 {strides = array<i32>} : memref<16x128xf32, #tpu.memory_space<vmem>>, vector<16x128xf32>,
    return
  }
}

</mosaic_0001>

<bundles_post_ra>
// kernel: tpu_custom_call.1
= control target key start
LH: loop header
LB: loop body
LE: loop exit
PB: predicated region body
PF: predicated region fallthrough
CT: control target
= control target key end

     0   :  { %6 = vsyncpa [#allocation3], 0  ;;  %s154_s0 = inlined_call_operand.hbm [shape: f32[16,128], index: 0, kind: input, shape index: {}]   ;;  %s155_s1 = inlined_call_operand.hbm [shape: f32[16,128], index: 1, kind: output, shape index: {}]  }
   0x1   :  { %7 = vsyncpa [#allocation4], 0  ;;  %s110_s6 = smov [#allocation2]   ;;  %s62_s10 = scalar_lea.hbm %s154_s0, 256 }
   0x2   :  { %s13_s7 = sshll.u32 %s110_s6, 4  ;;  %p63_p0 = scmp.ne.s32.totalorder %s154_s0, %s62_s10  ;;  %s14_s7 = int_to_ptr.vmem [resolvable:$true] %s13_s7 }
   0x3   :  { %p66_p1 = scmp.lt.u32.totalorder %s62_s10, %s154_s0 }
   0x5   :  { %p68_p2 = pnand %p66_p1, %p63_p0 }
   0x7   :  { %71 = shalt.err (!%p68_p2)
}
   0x8   :  { %s72_s15 = scalar_lea.vmem %s14_s7, 256  ;;  %p77_p4 = scmp.lt.s32.totalorder %s14_s7, %s14_s7 }
   0x9   :  { %p73_p3 = scmp.ne.s32.totalorder %s14_s7, %s72_s15  ;;  %p78_p5 = scmp.lt.s32.totalorder %s72_s15, %s72_s15 }
   0xb   :  { %p79_p6 = por %p78_p5, %p77_p4 }
   0xd   :  { %p80_p7 = pnand %p79_p6, %p73_p3 }
   0xf   :  { %83 = shalt.err (!%p80_p7)
}
  0x10   :  { %s111_s16 = smov 128   ;;  %s112_s17 = smov 8  }
  0x11   :  { %19 = dma.hbm_to_vmem [thread:$0]  %s154_s0, 256, %s14_s7, [#allocation3], %s111_s16, %s111_s16, %s112_s17  }
  0x12   :  { %106 = dma.done.wait [#allocation3], 256  }
  0x13   :  { %107 = vsyncadd [#allocation3], 4294967040  ;;  %v23_v0 = vld [vmem:[#allocation2] sm:$0xff]  ;;  %v24_v1 = vld [vmem:[#allocation2 + $0x8] sm:$0xff]  ;;  %s113_s20 = smov [#allocation5]  }
  0x14   :  { %v25_v2 = vmul.f32 0.5, %v23_v0  ;;  %v26_v3 = vmul.f32 0.5, %v24_v1  ;;  %s42_s21 = sshll.u32 %s113_s20, 4  ;;  %s43_s21 = int_to_ptr.vmem [resolvable:$true] %s42_s21 }
  0x15   :  { %s84_s0 = scalar_lea.vmem %s43_s21, 256  ;;  %p89_p9 = scmp.lt.s32.totalorder %s43_s21, %s43_s21 }
  0x16   :  { %58 = vtanh.f32 %v25_v2  ;;  %p85_p8 = scmp.ne.s32.totalorder %s43_s21, %s84_s0  ;;  %p90_p10 = scmp.lt.s32.totalorder %s84_s0, %s84_s0 }
  0x17   :  { %60 = vtanh.f32 %v26_v3 }
  0x18   :  { %p91_p11 = por %p90_p10, %p89_p9 }
  0x1a   :  { %p92_p12 = pnand %p91_p11, %p85_p8 }
  0x20   :  { %v59_v4 = vpop.eup %58 }
  0x21   :  { %v61_v5 = vpop.eup %60  ;;  %v29_v6 = vmul.f32 0.5, %v59_v4 }
  0x22   :  { %v30_v7 = vmul.f32 0.5, %v61_v5 }
  0x23   :  { %v31_v8 = vadd.f32 0.5, %v29_v6 }
  0x24   :  { %v32_v9 = vadd.f32 0.5, %v30_v7 }
  0x25   :  { %v33_v10 = vmul.f32 %v31_v8, %v23_v0 }
  0x26   :  { %v34_v11 = vmul.f32 %v32_v9, %v24_v1 }
  0x27   :  { %35 = vst [vmem:[#allocation5] sm:$0xff] %v33_v10 }
  0x28   :  { %36 = vst [vmem:[#allocation5 + $0x8] sm:$0xff] %v34_v11 }
  0x29   :  { %95 = shalt.err (!%p92_p12)
}
  0x2a   :  { %s96_s24 = scalar_lea.hbm %s155_s1, 256 }
  0x2b   :  { %p97_p13 = scmp.ne.s32.totalorder %s155_s1, %s96_s24  ;;  %p100_p0 = scmp.lt.u32.totalorder %s96_s24, %s155_s1 }
  0x2d   :  { %p102_p1 = pnand %p100_p0, %p97_p13 }
  0x2f   :  { %105 = shalt.err (!%p102_p1)
}
  0x30   :  { %48 = dma.vmem_to_hbm [thread:$0]  %s43_s21, 256, %s155_s1, [#allocation4], %s111_s16, %s111_s16, %s112_s17  }
  0x31   :  { %108 = dma.done.wait [#allocation4], 256  }
  0x32   :  { %109 = vsyncadd [#allocation4], 4294967040 }
  0x33   :  { %52 = vsyncpa [#allocation3], 1 }
  0x34   :  { %53 = vsyncpa [#allocation4], 1 }

</bundles_post_ra>
